<compile_context>
chip_gen: v7x
topology: tpu7x:2x2x1
jax: 0.10.0
libtpu: 0.0.40
codegen_flags: <defaults>
</compile_context>

<pallas_src>
import math
import functools

import jax
import jax.numpy as jnp
from jax import lax
from jax.experimental import pallas as pl
from jax.experimental.pallas import tpu as pltpu


# ---------------------------------------------------------------------------
# small host-side helpers (all shape logic is static / trace-time)
# ---------------------------------------------------------------------------
def _round_up(n, m):
    return -(-n // m) * m


def _row_tiling(n_rows, target):
    """Row tile (multiple of 8, <= target) and #grid steps; aims for >= 2 steps
    so both v7x TensorCores get work on 'parallel' axes."""
    n8 = _round_up(max(n_rows, 1), 8)
    if n8 <= 8:
        return 8, 1
    tile = min(_round_up(target, 8), n8)
    if n8 <= tile:                       # would be a single step -> split in two
        tile = _round_up(-(-n8 // 2), 8)
    steps = -(-n8 // tile)
    return tile, steps


def _pad_rows(x, rows):
    pad = rows - x.shape[0]
    return jnp.pad(x, ((0, pad), (0, 0))) if pad else x


def _vmem_limit(block_bytes):
    """Explicit scoped-VMEM budget: 2x (double buffering) + margin, clamped so it
    is valid on every chip (v7x physical VMEM is 64 MiB)."""
    return int(min(max(2 * block_bytes + (4 << 20), 32 << 20), 60 << 20))


# ---------------------------------------------------------------------------
# Pass 1: G = user^T @ user, accumulated over row tiles.
#   grid = (splits, steps_per_split); axis 0 is "parallel" (one partial Gram per
#   split -> both TCs on v7x), axis 1 is the "arbitrary" reduction axis.
# ---------------------------------------------------------------------------
def gram_kernel(user_ref, g_ref):
    @pl.when(pl.program_id(1) == 0)
    def _():
        g_ref[...] = jnp.zeros_like(g_ref)

    u = user_ref[...]                                       # (tu, E) bf16
    g = lax.dot_general(u, u, (((0,), (0,)), ((), ())),     # u^T @ u, no relayout
                        preferred_element_type=jnp.float32)
    g_ref[...] += g[None]


# ---------------------------------------------------------------------------
# Pass 2: fused attention-apply + AddNorm1 + FFN + AddNorm2, row-parallel.
#   a_ref: (n_attn, E, E) bf16 -- either [M] (folded) or [Wq@BD, Wo] (direct).
#   ln_ref: (4, E) f32 packed as [g1; b1; g2; b2].
# ---------------------------------------------------------------------------
def block_kernel(item_ref, a_ref, w1_ref, w2_ref, ln_ref, out_ref, *, n_attn, eps):
    def layer_norm(x, g, b):
        mu = jnp.mean(x, axis=-1, keepdims=True)
        xc = x - mu
        var = jnp.mean(xc * xc, axis=-1, keepdims=True)     # biased, like nn.LayerNorm
        return xc * lax.rsqrt(var + eps) * g + b

    item = item_ref[...]                                     # (ti, E) f32 residual path
    x16 = item.astype(jnp.bfloat16)
    attn = jnp.dot(x16, a_ref[0], preferred_element_type=jnp.float32)
    if n_attn == 2:                                          # direct: (item @ Wq BD) @ Wo
        attn = jnp.dot(attn.astype(jnp.bfloat16), a_ref[1],
                       preferred_element_type=jnp.float32)

    ln = ln_ref[...]
    y = layer_norm(attn + item, ln[0:1], ln[1:2])            # AddNorm1
    h = jnp.maximum(
        jnp.dot(y.astype(jnp.bfloat16), w1_ref[...],
                preferred_element_type=jnp.float32), 0.0)    # FFN up + ReLU
    ff = jnp.dot(h.astype(jnp.bfloat16), w2_ref[...],
                 preferred_element_type=jnp.float32)         # FFN down
    out_ref[...] = layer_norm(ff + y, ln[2:3], ln[3:4]).astype(out_ref.dtype)  # AddNorm2


# ---------------------------------------------------------------------------
# Wrapper
# ---------------------------------------------------------------------------
def cross_block(user, item, params, *, num_heads, block_rows=512,
                out_dtype=jnp.float32, single_buffer_weights=False):
    """CrossBlock forward. For best lane utilization keep E a multiple of 128.
    `out_dtype=jnp.bfloat16` halves output HBM writeback if the consumer allows it.
    `single_buffer_weights=True` single-buffers the resident weight blocks
    (recommended on v7x at large E)."""
    Bk, E = user.shape
    Bq, E2 = item.shape
    assert E == E2 and E % num_heads == 0
    d = E // num_heads
    f32, bf16 = jnp.float32, jnp.bfloat16

    # ---- pass 1: G = user^T @ user (bf16 streamed, f32 accumulated) ----------
    tu, steps_k = _row_tiling(Bk, block_rows)
    splits = 2 if (steps_k >= 2 and steps_k % 2 == 0) else 1
    sps = steps_k // splits                                  # steps per split
    user_bf = _pad_rows(user.astype(bf16), tu * steps_k)     # zero rows: exact no-op

    gram_parts = pl.pallas_call(
        gram_kernel,
        out_shape=jax.ShapeDtypeStruct((splits, E, E), f32),
        grid=(splits, sps),
        in_specs=[pl.BlockSpec((tu, E), lambda c, i: (c * sps + i, 0))],
        out_specs=pl.BlockSpec((1, E, E), lambda c, i: (c, 0, 0)),
        compiler_params=pltpu.CompilerParams(
            dimension_semantics=("parallel", "arbitrary"),
            vmem_limit_bytes=_vmem_limit(tu * E * 2 + E * E * 4)),
    )(user_bf)
    gram = gram_parts.sum(axis=0)                            # (E, E) f32

    # ---- glue (XLA): fold Wk, Wv, heads, Wq (and optionally Wo) --------------
    wk_r = params["Wk"].reshape(E, num_heads, d)
    gwv_r = (gram @ params["Wv"]).reshape(E, num_heads, d)
    ctx = jnp.einsum("ehi,ehj->ij", wk_r, gwv_r) * (1.0 / math.sqrt(d))   # (d, d)
    wq_r = params["Wq"].reshape(E, num_heads, d)
    a1 = jnp.einsum("ehi,ij->ehj", wq_r, ctx).reshape(E, E)  # Wq @ kron(I_H, ctx/sqrt d)

    fold = Bq >= E            # only pay the E^3 fold when the query batch amortizes it
    if fold:
        mats = (a1 @ params["Wo"])[None]                     # (1, E, E)
    else:
        mats = jnp.stack([a1, params["Wo"]])                 # (2, E, E)
    mats = mats.astype(bf16)
    n_a = int(mats.shape[0])

    # ---- pass 2: fused attention-apply + AddNorm1 + FFN + AddNorm2 -----------
    ti, steps_q = _row_tiling(Bq, block_rows)
    item_p = _pad_rows(item, ti * steps_q)
    ln_pack = jnp.concatenate(
        [params["g1"], params["b1"], params["g2"], params["b2"]], axis=0)  # (4, E) f32

    res = dict(pipeline_mode=pl.Buffered(1)) if single_buffer_weights else {}
    out_bytes = jnp.dtype(out_dtype).itemsize
    blk_bytes = (ti * E * 4 + ti * E * out_bytes
                 + (n_a * E * E + 4 * E * E) * 2 + 4 * E * 4)

    out = pl.pallas_call(
        functools.partial(block_kernel, n_attn=n_a, eps=1e-5),
        out_shape=jax.ShapeDtypeStruct((ti * steps_q, E), out_dtype),
        grid=(steps_q,),
        in_specs=[
            pl.BlockSpec((ti, E), lambda i: (i, 0)),                 # item rows (stream)
            pl.BlockSpec((n_a, E, E), lambda i: (0, 0, 0), **res),   # attn mats (resident)
            pl.BlockSpec((E, 2 * E), lambda i: (0, 0), **res),       # W1 (resident)
            pl.BlockSpec((2 * E, E), lambda i: (0, 0), **res),       # W2 (resident)
            pl.BlockSpec((4, E), lambda i: (0, 0), **res),           # packed LN params
        ],
        out_specs=pl.BlockSpec((ti, E), lambda i: (i, 0)),
        compiler_params=pltpu.CompilerParams(
            dimension_semantics=("parallel",),
            vmem_limit_bytes=_vmem_limit(blk_bytes)),
    )(item_p, mats,
      params["W1"].astype(bf16), params["W2"].astype(bf16), ln_pack)

    return out[:Bq] if out.shape[0] != Bq else out
    # TODO(synk): for tiny launch-latency-bound shapes, fuse the glue + pass 2 into
    # the last grid step of pass 1 to remove the HLO round trip between the passes.


# ---------------------------------------------------------------------------
# Pure-JAX f32 reference mirroring the PyTorch forward (eval mode)
# ---------------------------------------------------------------------------
def cross_block_reference(user, item, params, *, num_heads):
    Bq, E = item.shape
    Bk = user.shape[0]
    d = E // num_heads

    def ln(x, g, b):
        mu = jnp.mean(x, -1, keepdims=True)
        va = jnp.mean((x - mu) ** 2, -1, keepdims=True)
        return (x - mu) / jnp.sqrt(va + 1e-5) * g + b

    q = (item @ params["Wq"]).reshape(Bq * num_heads, d)
    k = (user @ params["Wk"]).reshape(Bk * num_heads, d)
    v = (user @ params["Wv"]).reshape(Bk * num_heads, d)
    w = q @ k.T / math.sqrt(d)                      # no softmax in the reference
    o = (w @ v).reshape(Bq, E)
    attn = o @ params["Wo"]
    y = ln(attn + item, params["g1"], params["b1"])
    ff = jnp.maximum(y @ params["W1"], 0.0) @ params["W2"]
    return ln(ff + y, params["g2"], params["b2"])


def init_params(key, embed_dim):
    E = embed_dim
    ks = jax.random.split(key, 6)
    scale = 1.0 / math.sqrt(E)
    return {
        # Linear weights stored as (in, out); PyTorch's y = x @ W.T is x @ W here.
        "Wq": jax.random.uniform(ks[0], (E, E), jnp.float32, -scale, scale),
        "Wk": jax.random.uniform(ks[1], (E, E), jnp.float32, -scale, scale),
        "Wv": jax.random.uniform(ks[2], (E, E), jnp.float32, -scale, scale),
        "Wo": jax.random.uniform(ks[3], (E, E), jnp.float32, -scale, scale),
        "W1": jax.random.uniform(ks[4], (E, 2 * E), jnp.float32, -scale, scale),
        "W2": jax.random.uniform(ks[5], (2 * E, E), jnp.float32,
                                 -1.0 / math.sqrt(2 * E), 1.0 / math.sqrt(2 * E)),
        # LayerNorm affine params (PyTorch init: ones / zeros), kept 2-D for TPU.
        "g1": jnp.ones((1, E), jnp.float32),
        "b1": jnp.zeros((1, E), jnp.float32),
        "g2": jnp.ones((1, E), jnp.float32),
        "b2": jnp.zeros((1, E), jnp.float32),
    }


if __name__ == "__main__":
    # Small but lane-dense demo: E is a multiple of 128 and both grids have 2 steps.
    B, E, H = 64, 128, 4                      # batch, embed_dim, num_heads (d = 32)

    key = jax.random.PRNGKey(0)
    k_user, k_item, k_params = jax.random.split(key, 3)
    user = jax.random.normal(k_user, (B, E), jnp.float32)
    item = jax.random.normal(k_item, (B, E), jnp.float32)
    params = init_params(k_params, E)

    fn = jax.jit(functools.partial(cross_block, num_heads=H))
    out = jax.block_until_ready(fn(user, item, params))

    ref = cross_block_reference(user, item, params, num_heads=H)
    assert out.shape == (B, E)
    # bf16 MXU operands (f32 accumulation) vs f32 reference.
    assert jnp.allclose(out, ref, atol=5e-2, rtol=5e-2), "mismatch vs JAX reference"

    print("KERNEL_OK")
</pallas_src>

<mosaic_0001>
module attributes {stable_mosaic.version = 11 : i64} {
  func.func @gram_kernel(%arg0: i32, %arg1: i32, %arg2: memref<32x128xbf16, #tpu.memory_space<vmem>>, %arg3: memref<1x128x128xf32, #tpu.memory_space<vmem>>) attributes {dimension_semantics = [#tpu.dimension_semantics<parallel>, #tpu.dimension_semantics<arbitrary>], iteration_bounds = array<i64: 2, 1>, scalar_prefetch = 0 : i64, scratch_operands = 0 : i64, tpu.core_type = #tpu.core_type<tc>, window_params = [{transform_indices = @transform_0, window_bounds = array<i64: 32, 128>}, {transform_indices = @transform_1, window_bounds = array<i64: 1, 128, 128>}]} {
    %c0_i32 = arith.constant 0 : i32
    %0 = arith.cmpi eq, %arg1, %c0_i32 : i32
    %1 = arith.extui %0 : i1 to i32
    %c0_i32_0 = arith.constant 0 : i32
    %2 = arith.cmpi ne, %1, %c0_i32_0 : i32
    scf.if %2 {
      %cst_8 = arith.constant 0.000000e+00 : f32
      %9 = vector.broadcast %cst_8 : f32 to vector<1x128x128xf32>
      %c0_9 = arith.constant 0 : index
      %c0_10 = arith.constant 0 : index
      %c0_11 = arith.constant 0 : index
      %10 = vector.load %arg3[%c0_9, %c0_10, %c0_11] : memref<1x128x128xf32, #tpu.memory_space<vmem>>, vector<1x128x128xf32>
      tpu.vector_store %arg3[%c0_9, %c0_10, %c0_11], %9 {strides = array<i32>} : memref<1x128x128xf32, #tpu.memory_space<vmem>>, vector<1x128x128xf32>,
    } else {
    }
    %c0 = arith.constant 0 : index
    %c0_1 = arith.constant 0 : index
    %3 = vector.load %arg2[%c0, %c0_1] : memref<32x128xbf16, #tpu.memory_space<vmem>>, vector<32x128xbf16>
    %cst = arith.constant dense<0.000000e+00> : vector<128x128xf32>
    %4 = tpu.matmul %3, %3, %cst {dimension_numbers = #tpu.dot_dimension_numbers<[0], [0], [1], [1], [0, 1, 1, 1], [], []>} : vector<32x128xbf16>, vector<32x128xbf16>, vector<128x128xf32> -> vector<128x128xf32>
    %c0_2 = arith.constant 0 : index
    %c0_3 = arith.constant 0 : index
    %c0_4 = arith.constant 0 : index
    %5 = vector.load %arg3[%c0_2, %c0_3, %c0_4] : memref<1x128x128xf32, #tpu.memory_space<vmem>>, vector<1x128x128xf32>
    %6 = vector.shape_cast %4 : vector<128x128xf32> to vector<1x128x128xf32>
    %7 = arith.addf %5, %6 : vector<1x128x128xf32>
    %c0_5 = arith.constant 0 : index
    %c0_6 = arith.constant 0 : index
    %c0_7 = arith.constant 0 : index
    %8 = vector.load %arg3[%c0_5, %c0_6, %c0_7] : memref<1x128x128xf32, #tpu.memory_space<vmem>>, vector<1x128x128xf32>
    tpu.vector_store %arg3[%c0_5, %c0_6, %c0_7], %7 {strides = array<i32>} : memref<1x128x128xf32, #tpu.memory_space<vmem>>, vector<1x128x128xf32>,
    return
  }
  func.func @transform_0(%arg0: i32, %arg1: i32) -> (i32, i32) {
    %c1_i32 = arith.constant 1 : i32
    %0 = arith.muli %arg0, %c1_i32 : i32
    %1 = arith.addi %0, %arg1 : i32
    %c0_i32 = arith.constant 0 : i32
    %c0_i32_0 = arith.constant 0 : i32
    return %1, %c0_i32 : i32, i32
  }
  func.func @transform_1(%arg0: i32, %arg1: i32) -> (i32, i32, i32) {
    %c0_i32 = arith.constant 0 : i32
    %c0_i32_0 = arith.constant 0 : i32
    %c0_i32_1 = arith.constant 0 : i32
    return %arg0, %c0_i32, %c0_i32_0 : i32, i32, i32
  }
}

module attributes {stable_mosaic.version = 11 : i64} {
  func.func @block_kernel(%arg0: i32, %arg1: memref<32x128xf32, #tpu.memory_space<vmem>>, %arg2: memref<2x128x128xbf16, #tpu.memory_space<vmem>>, %arg3: memref<128x256xbf16, #tpu.memory_space<vmem>>, %arg4: memref<256x128xbf16, #tpu.memory_space<vmem>>, %arg5: memref<4x128xf32, #tpu.memory_space<vmem>>, %arg6: memref<32x128xf32, #tpu.memory_space<vmem>>) attributes {dimension_semantics = [#tpu.dimension_semantics<parallel>], iteration_bounds = array<i64: 2>, scalar_prefetch = 0 : i64, scratch_operands = 0 : i64, tpu.core_type = #tpu.core_type<tc>, window_params = [{transform_indices = @transform_0, window_bounds = array<i64: 32, 128>}, {pipeline_mode = #tpu.pipeline_mode<synchronous>, transform_indices = @transform_1, window_bounds = array<i64: 2, 128, 128>}, {pipeline_mode = #tpu.pipeline_mode<synchronous>, transform_indices = @transform_2, window_bounds = array<i64: 128, 256>}, {pipeline_mode = #tpu.pipeline_mode<synchronous>, transform_indices = @transform_3, window_bounds = array<i64: 256, 128>}, {pipeline_mode = #tpu.pipeline_mode<synchronous>, transform_indices = @transform_4, window_bounds = array<i64: 4, 128>}, {transform_indices = @transform_5, window_bounds = array<i64: 32, 128>}]} {
    %c0 = arith.constant 0 : index
    %c0_0 = arith.constant 0 : index
    %0 = vector.load %arg1[%c0, %c0_0] : memref<32x128xf32, #tpu.memory_space<vmem>>, vector<32x128xf32>
    %1 = arith.truncf %0 : vector<32x128xf32> to vector<32x128xbf16>
    %c0_1 = arith.constant 0 : index
    %c0_2 = arith.constant 0 : index
    %c0_3 = arith.constant 0 : index
    %2 = vector.load %arg2[%c0_1, %c0_2, %c0_3] : memref<2x128x128xbf16, #tpu.memory_space<vmem>>, vector<1x128x128xbf16>
    %3 = vector.shape_cast %2 : vector<1x128x128xbf16> to vector<128x128xbf16>
    %cst = arith.constant dense<0.000000e+00> : vector<32x128xf32>
    %4 = tpu.matmul %1, %3, %cst {dimension_numbers = #tpu.dot_dimension_numbers<[1], [0], [0], [1], [0, 0, 1, 1], [], []>} : vector<32x128xbf16>, vector<128x128xbf16>, vector<32x128xf32> -> vector<32x128xf32>
    %5 = arith.truncf %4 : vector<32x128xf32> to vector<32x128xbf16>
    %c1 = arith.constant 1 : index
    %c0_4 = arith.constant 0 : index
    %c0_5 = arith.constant 0 : index
    %6 = vector.load %arg2[%c1, %c0_4, %c0_5] : memref<2x128x128xbf16, #tpu.memory_space<vmem>>, vector<1x128x128xbf16>
    %7 = vector.shape_cast %6 : vector<1x128x128xbf16> to vector<128x128xbf16>
    %cst_6 = arith.constant dense<0.000000e+00> : vector<32x128xf32>
    %8 = tpu.matmul %5, %7, %cst_6 {dimension_numbers = #tpu.dot_dimension_numbers<[1], [0], [0], [1], [0, 0, 1, 1], [], []>} : vector<32x128xbf16>, vector<128x128xbf16>, vector<32x128xf32> -> vector<32x128xf32>
    %c0_7 = arith.constant 0 : index
    %c0_8 = arith.constant 0 : index
    %9 = vector.load %arg5[%c0_7, %c0_8] : memref<4x128xf32, #tpu.memory_space<vmem>>, vector<4x128xf32>
    %10 = arith.addf %8, %0 : vector<32x128xf32>
    %11 = vector.extract_strided_slice %9 {offsets = [0, 0], sizes = [1, 128], strides = [1, 1]} : vector<4x128xf32> to vector<1x128xf32>
    %12 = vector.extract_strided_slice %9 {offsets = [1, 0], sizes = [1, 128], strides = [1, 1]} : vector<4x128xf32> to vector<1x128xf32>
    %cst_9 = arith.constant dense<0.000000e+00> : vector<32xf32>
    %13 = vector.multi_reduction <add>, %10, %cst_9 [1] : vector<32x128xf32> to vector<32xf32>
    %14 = vector.shape_cast %13 : vector<32xf32> to vector<32x1xf32>
    %cst_10 = arith.constant 1.280000e+02 : f32
    %15 = vector.broadcast %cst_10 : f32 to vector<32x1xf32>
    %16 = arith.divf %14, %15 : vector<32x1xf32>
    %17 = vector.broadcast %16 : vector<32x1xf32> to vector<32x128xf32>
    %18 = arith.subf %10, %17 : vector<32x128xf32>
    %19 = arith.mulf %18, %18 : vector<32x128xf32>
    %cst_11 = arith.constant dense<0.000000e+00> : vector<32xf32>
    %20 = vector.multi_reduction <add>, %19, %cst_11 [1] : vector<32x128xf32> to vector<32xf32>
    %21 = vector.shape_cast %20 : vector<32xf32> to vector<32x1xf32>
    %cst_12 = arith.constant 1.280000e+02 : f32
    %22 = vector.broadcast %cst_12 : f32 to vector<32x1xf32>
    %23 = arith.divf %21, %22 : vector<32x1xf32>
    %cst_13 = arith.constant 9.99999974E-6 : f32
    %24 = vector.broadcast %cst_13 : f32 to vector<32x1xf32>
    %25 = arith.addf %23, %24 : vector<32x1xf32>
    %26 = math.rsqrt %25 : vector<32x1xf32>
    %27 = vector.broadcast %26 : vector<32x1xf32> to vector<32x128xf32>
    %28 = arith.mulf %18, %27 : vector<32x128xf32>
    %29 = vector.broadcast %11 : vector<1x128xf32> to vector<32x128xf32>
    %30 = arith.mulf %28, %29 : vector<32x128xf32>
    %31 = vector.broadcast %12 : vector<1x128xf32> to vector<32x128xf32>
    %32 = arith.addf %30, %31 : vector<32x128xf32>
    %33 = arith.truncf %32 : vector<32x128xf32> to vector<32x128xbf16>
    %c0_14 = arith.constant 0 : index
    %c0_15 = arith.constant 0 : index
    %34 = vector.load %arg3[%c0_14, %c0_15] : memref<128x256xbf16, #tpu.memory_space<vmem>>, vector<128x256xbf16>
    %cst_16 = arith.constant dense<0.000000e+00> : vector<32x256xf32>
    %35 = tpu.matmul %33, %34, %cst_16 {dimension_numbers = #tpu.dot_dimension_numbers<[1], [0], [0], [1], [0, 0, 1, 1], [], []>} : vector<32x128xbf16>, vector<128x256xbf16>, vector<32x256xf32> -> vector<32x256xf32>
    %cst_17 = arith.constant 0.000000e+00 : f32
    %36 = vector.broadcast %cst_17 : f32 to vector<32x256xf32>
    %37 = arith.maximumf %35, %36 : vector<32x256xf32>
    %38 = arith.truncf %37 : vector<32x256xf32> to vector<32x256xbf16>
    %c0_18 = arith.constant 0 : index
    %c0_19 = arith.constant 0 : index
    %39 = vector.load %arg4[%c0_18, %c0_19] : memref<256x128xbf16, #tpu.memory_space<vmem>>, vector<256x128xbf16>
    %cst_20 = arith.constant dense<0.000000e+00> : vector<32x128xf32>
    %40 = tpu.matmul %38, %39, %cst_20 {dimension_numbers = #tpu.dot_dimension_numbers<[1], [0], [0], [1], [0, 0, 1, 1], [], []>} : vector<32x256xbf16>, vector<256x128xbf16>, vector<32x128xf32> -> vector<32x128xf32>
    %41 = arith.addf %40, %32 : vector<32x128xf32>
    %42 = vector.extract_strided_slice %9 {offsets = [2, 0], sizes = [1, 128], strides = [1, 1]} : vector<4x128xf32> to vector<1x128xf32>
    %43 = vector.extract_strided_slice %9 {offsets = [3, 0], sizes = [1, 128], strides = [1, 1]} : vector<4x128xf32> to vector<1x128xf32>
    %cst_21 = arith.constant dense<0.000000e+00> : vector<32xf32>
    %44 = vector.multi_reduction <add>, %41, %cst_21 [1] : vector<32x128xf32> to vector<32xf32>
    %45 = vector.shape_cast %44 : vector<32xf32> to vector<32x1xf32>
    %cst_22 = arith.constant 1.280000e+02 : f32
    %46 = vector.broadcast %cst_22 : f32 to vector<32x1xf32>
    %47 = arith.divf %45, %46 : vector<32x1xf32>
    %48 = vector.broadcast %47 : vector<32x1xf32> to vector<32x128xf32>
    %49 = arith.subf %41, %48 : vector<32x128xf32>
    %50 = arith.mulf %49, %49 : vector<32x128xf32>
    %cst_23 = arith.constant dense<0.000000e+00> : vector<32xf32>
    %51 = vector.multi_reduction <add>, %50, %cst_23 [1] : vector<32x128xf32> to vector<32xf32>
    %52 = vector.shape_cast %51 : vector<32xf32> to vector<32x1xf32>
    %cst_24 = arith.constant 1.280000e+02 : f32
    %53 = vector.broadcast %cst_24 : f32 to vector<32x1xf32>
    %54 = arith.divf %52, %53 : vector<32x1xf32>
    %cst_25 = arith.constant 9.99999974E-6 : f32
    %55 = vector.broadcast %cst_25 : f32 to vector<32x1xf32>
    %56 = arith.addf %54, %55 : vector<32x1xf32>
    %57 = math.rsqrt %56 : vector<32x1xf32>
    %58 = vector.broadcast %57 : vector<32x1xf32> to vector<32x128xf32>
    %59 = arith.mulf %49, %58 : vector<32x128xf32>
    %60 = vector.broadcast %42 : vector<1x128xf32> to vector<32x128xf32>
    %61 = arith.mulf %59, %60 : vector<32x128xf32>
    %62 = vector.broadcast %43 : vector<1x128xf32> to vector<32x128xf32>
    %63 = arith.addf %61, %62 : vector<32x128xf32>
    %c0_26 = arith.constant 0 : index
    %c0_27 = arith.constant 0 : index
    %64 = vector.load %arg6[%c0_26, %c0_27] : memref<32x128xf32, #tpu.memory_space<vmem>>, vector<32x128xf32>
    tpu.vector_store %arg6[%c0_26, %c0_27], %63 {strides = array<i32>} : memref<32x128xf32, #tpu.memory_space<vmem>>, vector<32x128xf32>,
    return
  }
  func.func @transform_0(%arg0: i32) -> (i32, i32) {
    %c0_i32 = arith.constant 0 : i32
    %c0_i32_0 = arith.constant 0 : i32
    return %arg0, %c0_i32 : i32, i32
  }
  func.func @transform_1(%arg0: i32) -> (i32, i32, i32) {
    %c0_i32 = arith.constant 0 : i32
    %c0_i32_0 = arith.constant 0 : i32
    %c0_i32_1 = arith.constant 0 : i32
    %c0_i32_2 = arith.constant 0 : i32
    return %c0_i32, %c0_i32_0, %c0_i32_1 : i32, i32, i32
  }
  func.func @transform_2(%arg0: i32) -> (i32, i32) {
    %c0_i32 = arith.constant 0 : i32
    %c0_i32_0 = arith.constant 0 : i32
    %c0_i32_1 = arith.constant 0 : i32
    return %c0_i32, %c0_i32_0 : i32, i32
  }
  func.func @transform_3(%arg0: i32) -> (i32, i32) {
    %c0_i32 = arith.constant 0 : i32
    %c0_i32_0 = arith.constant 0 : i32
    %c0_i32_1 = arith.constant 0 : i32
    return %c0_i32, %c0_i32_0 : i32, i32
  }
  func.func @transform_4(%arg0: i32) -> (i32, i32) {
    %c0_i32 = arith.constant 0 : i32
    %c0_i32_0 = arith.constant 0 : i32
    %c0_i32_1 = arith.constant 0 : i32
    return %c0_i32, %c0_i32_0 : i32, i32
  }
  func.func @transform_5(%arg0: i32) -> (i32, i32) {
    %c0_i32 = arith.constant 0 : i32
    %c0_i32_0 = arith.constant 0 : i32
    return %arg0, %c0_i32 : i32, i32
  }
}

</mosaic_0001>

<bundles_post_ra>
// kernel: cross_block.2
= control target key start
LH: loop header
LB: loop body
LE: loop exit
PB: predicated region body
PF: predicated region fallthrough
CT: control target
= control target key end

     0   :  { %s542_s6 = smov 0   ;;  %s544_s7 = smov 0   ;;  %s606_s0 = inlined_call_operand.vmem [shape: bf16[64,128], index: 0, kind: input, shape index: {}]   ;;  %s607_s1 = inlined_call_operand.vmem [shape: f32[2,128,128], index: 1, kind: output, shape index: {}]  }
   0x1   :  { %s546_s8 = smov 0  }
   0x2 LB: > { %s23_s9 = sadd.s32 1, %s526_s7  ;;  %p428_p0 = scmp.ge.s32.totalorder %s530_s8, 1  ;;  %s530_s8 = sphi %s546_s8, %s11_s8   ;;  %s526_s7 = sphi %s544_s7, %s609_s7   ;;  %s522_s6 = sphi %s542_s6, %s608_s6  }
   0x3   : > { %p25_p1 = scmp.ge.s32.totalorder %s23_s9, 2  ;;  %p104_p2 = scmp.lt.s32.totalorder %s530_s8, 3 }
   0x5   : > { %s611_s9 = smov (%p25_p1, %s23_s9), 0  ;;  %p105_p3 = pnand %p428_p0, %p104_p2 }
   0x6   : > { %s429_s10 = sshll.u32 (!%p105_p3), %s522_s6, 2  ;;  %vm191_vm0 = vcmask (!%p105_p3), 261120   ;;  %p133_p5 = scmp.lt.s32.totalorder (!%p105_p3), %s522_s6, 1 }
   0x7   : > { %108 = sbr.rel (%p105_p3) target bundleno = 365 (0x16d), region = 24  ;;  %p127_p4 = scmp.lt.s32.totalorder (!%p105_p3), %s429_s10, 7 }
   0xe   : > { %s613_s10 = smov (!%p127_p4, %s429_s10), 7  ;;  %s615_s6 = smov (!%p133_p5, %s522_s6), 1 }
   0xf   : > { %s430_s11 = sshll.u32 %s613_s10, 2  ;;  %s445_s15 = sshll.u32 %s615_s6, 7 }
  0x10   : > { %s130_s14 = scalar_lea.vmem %s606_s0, %s430_s11  ;;  %s579_s18 = scalar_lea.vmem %s607_s1, %s445_s15 }
  0x11   : > { %v506_v0 = vld [vmem:[%s130_s14] sm:$0xff]   ;;  %v507_v1 = vld [vmem:[%s130_s14 + $0x8] sm:$0xff]  }
  0x12   : > { %175 = vxpose.xlu0.c.b16.start [1/2] (short) %v506_v0, 128  ;;  %456 = vmatprep.subr.bf16.mxu0 %v506_v0 }
  0x13   : > { %457 = vmatpush3.bf16.msra.mxu0 %v506_v0  ;;  %476 = vmatprep.subr.bf16.mxu1 %v506_v0 }
  0x14   : > { %458 = vmatprep.subr.bf16.mxu0 %v507_v1  ;;  %478 = vmatpush3.bf16.msra.mxu1 %v506_v0 }
  0x15   : > { %477 = vmatprep.subr.bf16.mxu1 %v507_v1 }
  0x16   : > { %176 = vxpose.xlu0.c.b16.end [2/2] (short) %v507_v1, 128 }
  0x17   : > { %459 = vmatpush3.bf16.msra.mxu0 %v507_v1 }
  0x18   : > { %479 = vmatpush3.bf16.msra.mxu1 %v507_v1 }
  0x78   : > { %v183_v2 = vpop.trf.xlu0 }
  0x79   : > { %460 = vmatprep.mubr.msk.bf16.mxu0 %vm191_vm0, %v183_v2 }
  0x7c   : > { %v184_v3 = vpop.trf.xlu0 }
  0x7d   : > { %461 = vmatmul.mubr.msk.bf16.vlgmr.msra.gmra.mrb[0].mxu0 %vm191_vm0, %v184_v3 }
  0x80   : > { %v185_v4 = vpop.trf.xlu0 }
  0x81   : > { %464 = vmatprep.mubr.msk.bf16.mxu0 %vm191_vm0, %v185_v4 }
  0x84   : > { %v186_v5 = vpop.trf.xlu0 }
  0x85   : > { %465 = vmatmul.mubr.msk.bf16.gmra.mrb[4].mxu0 %vm191_vm0, %v186_v5 }
  0x88   : > { %v187_v6 = vpop.trf.xlu0 }
  0x89   : > { %468 = vmatprep.mubr.msk.bf16.mxu1 %vm191_vm0, %v187_v6 }
  0x8c   : > { %v188_v7 = vpop.trf.xlu0 }
  0x8d   : > { %469 = vmatmul.mubr.msk.bf16.vlgmr.msra.gmra.mrb[0].mxu1 %vm191_vm0, %v188_v7 }
  0x90   : > { %v189_v8 = vpop.trf.xlu0 }
  0x91   : > { %472 = vmatprep.mubr.msk.bf16.mxu1 %vm191_vm0, %v189_v8 }
  0x94   : > { %v190_v9 = vpop.trf.xlu0 }
  0x95   : > { %473 = vmatmul.mubr.msk.bf16.gmra.mrb[4].mxu1 %vm191_vm0, %v190_v9 }
 0x150   : > { %v462_v10 = vpop.f32.mrb[0].mxu0 }
 0x151   : > { %v250_v11 = vpop.f32.mrb[1].mxu0  ;;  %347 = vst [vmem:[%s579_s18 + $0x10] sm:$0xff] %v462_v10 }
 0x152   : > { %v463_v12 = vpop.f32.mrb[2].mxu0  ;;  %345 = vst [vmem:[%s579_s18] sm:$0xff] %v250_v11 }
 0x153   : > { %v253_v13 = vpop.f32.mrb[3].mxu0  ;;  %348 = vst [vmem:[%s579_s18 + $0x18] sm:$0xff] %v463_v12 }
 0x154   : > { %346 = vst [vmem:[%s579_s18 + $0x8] sm:$0xff] %v253_v13 }
 0x158   : > { %v466_v14 = vpop.f32.mrb[4].mxu0 }
 0x159   : > { %v266_v15 = vpop.f32.mrb[5].mxu0  ;;  %351 = vst [vmem:[%s579_s18 + $0x30] sm:$0xff] %v466_v14 }
 0x15a   : > { %v467_v16 = vpop.f32.mrb[6].mxu0  ;;  %349 = vst [vmem:[%s579_s18 + $0x20] sm:$0xff] %v266_v15 }
 0x15b   : > { %v269_v17 = vpop.f32.mrb[7].mxu0  ;;  %352 = vst [vmem:[%s579_s18 + $0x38] sm:$0xff] %v467_v16 }
 0x15c   : > { %350 = vst [vmem:[%s579_s18 + $0x28] sm:$0xff] %v269_v17 }
 0x160   : > { %v470_v18 = vpop.f32.mrb[0].mxu1 }
 0x161   : > { %v282_v19 = vpop.f32.mrb[1].mxu1  ;;  %355 = vst [vmem:[%s579_s18 + $0x50] sm:$0xff] %v470_v18 }
 0x162   : > { %v471_v20 = vpop.f32.mrb[2].mxu1  ;;  %353 = vst [vmem:[%s579_s18 + $0x40] sm:$0xff] %v282_v19 }
 0x163   : > { %v285_v21 = vpop.f32.mrb[3].mxu1  ;;  %356 = vst [vmem:[%s579_s18 + $0x58] sm:$0xff] %v471_v20 }
 0x164   : > { %354 = vst [vmem:[%s579_s18 + $0x48] sm:$0xff] %v285_v21 }
 0x168   : > { %v474_v22 = vpop.f32.mrb[4].mxu1 }
 0x169   : > { %v298_v23 = vpop.f32.mrb[5].mxu1  ;;  %359 = vst [vmem:[%s579_s18 + $0x70] sm:$0xff] %v474_v22 }
 0x16a   : > { %v475_v24 = vpop.f32.mrb[6].mxu1  ;;  %357 = vst [vmem:[%s579_s18 + $0x60] sm:$0xff] %v298_v23 }
 0x16b   : > { %v301_v25 = vpop.f32.mrb[7].mxu1  ;;  %360 = vst [vmem:[%s579_s18 + $0x78] sm:$0xff] %v475_v24 }
 0x16c   : > { %358 = vst [vmem:[%s579_s18 + $0x68] sm:$0xff] %v301_v25 }
 0x16d PF: > { %s11_s8 = sadd.s32 1, %s530_s8   ;;  %s608_s6 = smov %s526_s7 }
 0x16e   : > { %p8_p6 = scmp.ge.s32.totalorder %s11_s8, 4   ;;  %s609_s7 = smov %s611_s9 }
 0x170   :  { %10 = sbr.rel (!%p8_p6) target bundleno = 2 (0x2), region = 58 }

// kernel: cross_block.3
= control target key start
LH: loop header
LB: loop body
LE: loop exit
PB: predicated region body
PF: predicated region fallthrough
CT: control target
= control target key end

     0   :  { %10 = vsyncpa [#allocation3], 0  ;;  %s1678_s0 = inlined_call_operand.vmem [shape: f32[64,128], index: 0, kind: input, shape index: {}]   ;;  %s1679_s1 = inlined_call_operand.vmem [shape: bf16[2,128,128], index: 1, kind: input, shape index: {}]   ;;  %s1680_s2 = inlined_call_operand.vmem [shape: bf16[128,256], index: 2, kind: input, shape index: {}]   ;;  %s1681_s3 = inlined_call_operand.vmem [shape: bf16[256,128], index: 3, kind: input, shape index: {}]   ;;  %s1682_s4 = inlined_call_operand.vmem [shape: f32[4,128], index: 4, kind: input, shape index: {}]   ;;  %s1683_s5 = inlined_call_operand.hbm [shape: f32[64,128], index: 5, kind: output, shape index: {}]  }
   0x1   :  { %12 = vsyncpa [#allocation3 + $0x1], 0  ;;  %s1381_s18 = smov 0   ;;  %s1383_s19 = smov 0  }
   0x2   :  { %s1385_s20 = smov 0   ;;  %s1387_s21 = smov 0  }
   0x3 LB: > { %s1402_s22 = sadd.s32 4294967295, %s1345_s21   ;;  %s1004_s23 = sadd.s32 4294967294, %s1345_s21   ;;  %s1345_s21 = sphi %s1387_s21, %s1689_s21   ;;  %s1341_s20 = sphi %s1385_s20, %s1688_s20   ;;  %s1337_s19 = sphi %s1383_s19, %s1687_s19   ;;  %s1333_s18 = sphi %s1381_s18, %s1686_s18  }
   0x4   : > { %s1406_s24 = sadd.s32 1, %s1345_s21   ;;  %s135_s25 = sadd.s32 1, %s1341_s20 }
   0x5   : > { %s132_s26 = ssub.s32 %s1345_s21, %s1406_s24  ;;  %p145_p0 = scmp.ne.s32.totalorder %s1341_s20, %s1337_s19 }
   0x6   : > { %p133_p1 = scmp.eq.s32.totalorder %s132_s26, 0  ;;  %p146_p2 = scmp.eq.s32.totalorder %s1402_s22, 1 }
   0x7   : > { %p151_p3 = scmp.ne.s32.totalorder %s1337_s19, %s1333_s18  ;;  %p152_p4 = scmp.eq.s32.totalorder %s1004_s23, 1 }
   0x8   : > { %s1417_s27 = scalar_select %p133_p1, %s1341_s20, %s135_s25  }
   0x9   : > { %p1419_p5 = por %p146_p2, %p145_p0  ;;  %p1423_p6 = por %p152_p4, %p151_p3 }
   0xa   : > { %p1007_p7 = scmp.ge.s32.totalorder %s1345_s21, 1  ;;  %p191_p8 = scmp.lt.s32.totalorder %s1345_s21, 3 }
   0xc   : > { %p192_p9 = pnand %p1007_p7, %p191_p8 }
   0xd   : > { %v1211_v0 = vld [vmem:[%s1679_s1] sm:$0xff] (!%p192_p9)   ;;  %v1212_v1 = vld [vmem:[%s1679_s1 + $0x8] sm:$0xff] (!%p192_p9)   ;;  %v1213_v2 = vld [vmem:[%s1679_s1 + $0x10] sm:$0xff] (!%p192_p9)   ;;  %s1009_s13 = sshll.u32 (!%p192_p9), %s1402_s22, 2  ;;  %s1080_s16 = sshll.u32 (!%p192_p9), %s1402_s22, 9 }
   0xe   : > { %195 = sbr.rel (%p192_p9) target bundleno = 1569 (0x621), region = 40  ;;  %1129 = vmatprep.subr.bf16.mxu0 (!%p192_p9), %v1211_v0  ;;  %v1214_v3 = vld [vmem:[%s1679_s1 + $0x18] sm:$0xff] (!%p192_p9)   ;;  %v1219_v4 = vld [vmem:[%s1679_s1 + $0x40] sm:$0xff] (!%p192_p9)   ;;  %v1220_v5 = vld [vmem:[%s1679_s1 + $0x48] sm:$0xff] (!%p192_p9)   ;;  %p220_p10 = scmp.lt.s32.totalorder (!%p192_p9), %s1009_s13, 7 }
   0xf   : > { %1130 = vmatpush3.bf16.msra.mxu0 (!%p192_p9), %v1211_v0  ;;  %1149 = vmatprep.subr.bf16.mxu1 (!%p192_p9), %v1219_v4  ;;  %v1215_v6 = vld [vmem:[%s1679_s1 + $0x20] sm:$0xff] (!%p192_p9)   ;;  %v1221_v7 = vld [vmem:[%s1679_s1 + $0x50] sm:$0xff] (!%p192_p9)   ;;  %v1216_v8 = vld [vmem:[%s1679_s1 + $0x28] sm:$0xff] (!%p192_p9)   ;;  %s1348_s30 = smov (!%p192_p9), [#allocation2]  }
  0x10   : > { %1131 = vmatprep.subr.bf16.mxu0 (!%p192_p9), %v1212_v1  ;;  %1150 = vmatpush3.bf16.msra.mxu1 (!%p192_p9), %v1219_v4  ;;  %v1222_v9 = vld [vmem:[%s1679_s1 + $0x58] sm:$0xff] (!%p192_p9)   ;;  %v1217_v10 = vld [vmem:[%s1679_s1 + $0x30] sm:$0xff] (!%p192_p9)   ;;  %v1223_v11 = vld [vmem:[%s1679_s1 + $0x60] sm:$0xff] (!%p192_p9)   ;;  %v1347_v4 = vmov (!%p192_p9), 0   ;;  %s1287_s6 = sshll.u32 (!%p192_p9), %s1348_s30, 4  ;;  %s1288_s6 = int_to_ptr.vmem [resolvable:$false] %s1287_s6 }
  0x11   : > { %1151 = vmatprep.subr.bf16.mxu1 (!%p192_p9), %v1220_v5  ;;  %v1218_v12 = vld [vmem:[%s1679_s1 + $0x38] sm:$0xff] (!%p192_p9)   ;;  %v1224_v13 = vld [vmem:[%s1679_s1 + $0x68] sm:$0xff] (!%p192_p9)   ;;  %v1225_v16 = vld [vmem:[%s1679_s1 + $0x70] sm:$0xff] (!%p192_p9)   ;;  %s1289_s7 = scalar_lea.vmem (!%p192_p9), %s1288_s6, 1024 }
  0x12   : > { %v1226_v18 = vld [vmem:[%s1679_s1 + $0x78] sm:$0xff] (!%p192_p9)   ;;  %v1227_v35 = vld [vmem:[%s1680_s2] ss:$8 sps:$4 sm:$0xff] (!%p192_p9)   ;;  %v1229_v36 = vld [vmem:[%s1680_s2 + $0x4] ss:$8 sps:$4 sm:$0xff] (!%p192_p9)  }
  0x13   : > { %1132 = vmatpush3.bf16.msra.mxu0 (!%p192_p9), %v1212_v1  ;;  %v1232_v37 = vld [vmem:[%s1680_s2 + $0x14] ss:$8 sps:$4 sm:$0xff] (!%p192_p9)   ;;  %v1230_v38 = vld [vmem:[%s1680_s2 + $0x10] ss:$8 sps:$4 sm:$0xff] (!%p192_p9)   ;;  %v1235_v55 = vld [vmem:[%s1680_s2 + $0x24] ss:$8 sps:$4 sm:$0xff] (!%p192_p9)  }
  0x14   : > { %1133 = vmatprep.subr.bf16.mxu0 (!%p192_p9), %v1213_v2  ;;  %1152 = vmatpush3.bf16.msra.mxu1 (!%p192_p9), %v1220_v5  ;;  %v1233_v56 = vld [vmem:[%s1680_s2 + $0x20] ss:$8 sps:$4 sm:$0xff] (!%p192_p9)   ;;  %v1238_v57 = vld [vmem:[%s1680_s2 + $0x34] ss:$8 sps:$4 sm:$0xff] (!%p192_p9)   ;;  %v1236_v58 = vld [vmem:[%s1680_s2 + $0x30] ss:$8 sps:$4 sm:$0xff] (!%p192_p9)  }
  0x15   : > { %s1691_s13 = smov (!%p220_p10, %s1009_s13), 7  ;;  %1153 = vmatprep.subr.bf16.mxu1 %v1221_v7  ;;  %v1241_v59 = vld [vmem:[%s1680_s2 + $0x44] ss:$8 sps:$4 sm:$0xff]   ;;  %v1239_v60 = vld [vmem:[%s1680_s2 + $0x40] ss:$8 sps:$4 sm:$0xff]  }
  0x16   : > { %s1010_s12 = sshll.u32 %s1691_s13, 3  ;;  %v1244_v61 = vld [vmem:[%s1680_s2 + $0x54] ss:$8 sps:$4 sm:$0xff]   ;;  %v1242_v62 = vld [vmem:[%s1680_s2 + $0x50] ss:$8 sps:$4 sm:$0xff]   ;;  %v1251_v5 = vld [vmem:[%s1681_s3 + $0x40] sm:$0xff]  }
  0x17   : > { %1134 = vmatpush3.bf16.msra.mxu0 %v1213_v2  ;;  %s1472_s26 = scalar_lea.vmem %s1678_s0, %s1010_s12  ;;  %v1247_v63 = vld [vmem:[%s1680_s2 + $0x64] ss:$8 sps:$4 sm:$0xff]   ;;  %v1245_v0 = vld [vmem:[%s1680_s2 + $0x60] ss:$8 sps:$4 sm:$0xff]   ;;  %v1250_v1 = vld [vmem:[%s1680_s2 + $0x74] ss:$8 sps:$4 sm:$0xff]  }
  0x18   : > { %1135 = vmatprep.subr.bf16.mxu0 %v1214_v3  ;;  %1154 = vmatpush3.bf16.msra.mxu1 %v1221_v7  ;;  %v229_v14 = vld [vmem:[%s1472_s26 + $0x10] sm:$0xff]  ;;  %v230_v15 = vld [vmem:[%s1472_s26 + $0x18] sm:$0xff]  ;;  %v1486_v25 = vld [vmem:[%s1472_s26] sm:$0xff]  ;;  %s216_s12 = sand.u32 1, %s1337_s19  }
  0x19   : > { %1155 = vmatprep.subr.bf16.mxu1 %v1222_v9  ;;  %v232_v17 = vpack.c.bf16 %v230_v15, %v229_v14  ;;  %v228_v31 = vld [vmem:[%s1472_s26 + $0x8] sm:$0xff]  ;;  %s1008_s14 = sshll.u32 %s216_s12, 5  ;;  %s1631_s26 = scalar_lea.hbm %s1683_s5, %s1080_s16 }
  0x1a   : > { %v231_v2 = vpack.c.bf16 %v228_v31, %v1486_v25  ;;  %v1253_v7 = vld [vmem:[%s1681_s3 + $0x48] sm:$0xff]   ;;  %s218_s15 = scalar_lea.vmem [#allocation2], %s1008_s14  ;;  %s1637_s13 = scalar_lea.sflag [#allocation3], %s216_s12 }
  0x1b   : > { %1136 = vmatpush3.bf16.msra.mxu0 %v1214_v3  ;;  %v1248_v3 = vld [vmem:[%s1680_s2 + $0x70] ss:$8 sps:$4 sm:$0xff]   ;;  %s942_s17 = sshll.u32 %s218_s15, 4  ;;  %s1633_s17 = int_to_ptr.vmem [resolvable:$true] %s942_s17 }
  0x1c   : > { %1137 = vmatprep.subr.bf16.mxu0 %v1215_v6  ;;  %1156 = vmatpush3.bf16.msra.mxu1 %v1222_v9  ;;  %v1255_v9 = vld [vmem:[%s1681_s3 + $0x50] sm:$0xff]   ;;  %s1283_s22 = scalar_lea.vmem %s1633_s17, 512  ;;  %p1290_p0 = scmp.lt.s32.totalorder %s1633_s17, %s1288_s6 }
  0x1d   : > { %1157 = vmatprep.subr.bf16.mxu1 %v1223_v11  ;;  %p1284_p11 = scmp.ne.s32.totalorder %s1633_s17, %s1283_s22  ;;  %p1291_p1 = scmp.lt.s32.totalorder %s1289_s7, %s1283_s22 }
  0x1f   : > { %1138 = vmatpush3.bf16.msra.mxu0 %v1215_v6  ;;  %v1252_v6 = vld [vmem:[%s1681_s3] sm:$0xff]   ;;  %p1285_p12 = pnand %p1284_p11, %p1419_p5  ;;  %p1292_p2 = por %p1291_p1, %p1290_p0 }
  0x20   : > { %1139 = vmatprep.subr.bf16.mxu0 %v1216_v8  ;;  %1158 = vmatpush3.bf16.msra.mxu1 %v1223_v11  ;;  %v1257_v11 = vld [vmem:[%s1681_s3 + $0x58] sm:$0xff]  }
  0x21   : > { %1159 = vmatprep.subr.bf16.mxu1 %v1224_v13  ;;  %p1286_p13 = pneg %p1285_p12 }
  0x23   : > { %1140 = vmatpush3.bf16.msra.mxu0 %v1216_v8  ;;  %v1254_v8 = vld [vmem:[%s1681_s3 + $0x8] sm:$0xff]   ;;  %p1293_p3 = pnand %p1292_p2, %p1286_p13 }
  0x24   : > { %1141 = vmatprep.subr.bf16.mxu0 %v1217_v10  ;;  %1160 = vmatpush3.bf16.msra.mxu1 %v1224_v13  ;;  %v1259_v13 = vld [vmem:[%s1681_s3 + $0x60] sm:$0xff]  }
  0x25   : > { %1161 = vmatprep.subr.bf16.mxu1 %v1225_v16 }
  0x27   : > { %1142 = vmatpush3.bf16.msra.mxu0 %v1217_v10  ;;  %v1256_v10 = vld [vmem:[%s1681_s3 + $0x10] sm:$0xff]  }
  0x28   : > { %1143 = vmatprep.subr.bf16.mxu0 %v1218_v12  ;;  %1162 = vmatpush3.bf16.msra.mxu1 %v1225_v16  ;;  %v1262_v16 = vld [vmem:[%s1681_s3 + $0x28] sm:$0xff]  }
  0x29   : > { %1163 = vmatprep.subr.bf16.mxu1 %v1226_v18 }
  0x2b   : > { %1144 = vmatpush3.bf16.msra.mxu0 %v1218_v12  ;;  %v1258_v12 = vld [vmem:[%s1681_s3 + $0x18] sm:$0xff]  }
  0x2c   : > { %1164 = vmatpush3.bf16.msra.mxu1 %v1226_v18  ;;  %622 = vmatprep.subr.bf16.mxu0 %v1229_v36 }
  0x2d   : > { %1101 = vmatprep.subr.bf16.mxu1 %v1251_v5 }
  0x2e   : > { %1146 = vmatmul.mubr.bf16.vlgmr.msra.gmra.mrb[0].mxu0 %v232_v17 }
  0x2f   : > { %623 = vmatpush1.bf16.msra.mxu0 %v1227_v35  ;;  %1145 = vmatprep.mubr.bf16.mxu0 %v231_v2 }
  0x30   : > { %624 = vmatprep.subr.bf16.mxu0 %v1232_v37  ;;  %654 = vmatprep.mubr.bf16.mxu0 %v1347_v4 }
  0x33   : > { %625 = vmatpush1.bf16.msra.mxu0 %v1230_v38 }
  0x34   : > { %626 = vmatprep.subr.bf16.mxu0 %v1235_v55 }
  0x37   : > { %627 = vmatpush1.bf16.msra.mxu0 %v1233_v56  ;;  %v1263_v56 = vld [vmem:[%s1681_s3 + $0x70] sm:$0xff]  }
  0x38   : > { %628 = vmatprep.subr.bf16.mxu0 %v1238_v57  ;;  %v1266_v57 = vld [vmem:[%s1681_s3 + $0x38] sm:$0xff]  }
  0x3b   : > { %629 = vmatpush1.bf16.msra.mxu0 %v1236_v58 }
  0x3c   : > { %630 = vmatprep.subr.bf16.mxu0 %v1241_v59 }
  0x3f   : > { %631 = vmatpush1.bf16.msra.mxu0 %v1239_v60 }
  0x40   : > { %632 = vmatprep.subr.bf16.mxu0 %v1244_v61 }
  0x43   : > { %633 = vmatpush1.bf16.msra.mxu0 %v1242_v62 }
  0x44   : > { %634 = vmatprep.subr.bf16.mxu0 %v1247_v63 }
  0x47   : > { %635 = vmatpush1.bf16.msra.mxu0 %v1245_v0 }
  0x48   : > { %636 = vmatprep.subr.bf16.mxu0 %v1250_v1 }
  0x4b   : > { %637 = vmatpush1.bf16.msra.mxu0 %v1248_v3 }
 0x101   : > { %v1147_v19 = vpop.f32.mrb[0].mxu0 }
 0x102   : > { %v331_v20 = vpop.f32.mrb[1].mxu0 }
 0x103   : > { %v1148_v21 = vpop.f32.mrb[2].mxu0 }
 0x104   : > { %v347_v22 = vpack.c.bf16 %v1148_v21, %v1147_v19  ;;  %v334_v23 = vpop.f32.mrb[3].mxu0 }
 0x105   : > { %v346_v24 = vpack.c.bf16 %v334_v23, %v331_v20 }
 0x107   : > { %1165 = vmatprep.mubr.bf16.mxu1 %v346_v24 }
 0x108   : > { %1166 = vmatmul.mubr.bf16.vlgmr.msra.gmra.mrb[0].mxu1 %v347_v22  ;;  %v508_v22 = vlaneseq }
 0x109   : > { %1102 = vmatpush3.bf16.msra.mxu1 %v1252_v6 }
 0x10a   : > { %1103 = vmatprep.subr.bf16.mxu1 %v1253_v7 }
 0x10d   : > { %1104 = vmatpush3.bf16.msra.mxu1 %v1254_v8 }
 0x10e   : > { %1105 = vmatprep.subr.bf16.mxu1 %v1255_v9 }
 0x111   : > { %1106 = vmatpush3.bf16.msra.mxu1 %v1256_v10 }
 0x112   : > { %1107 = vmatprep.subr.bf16.mxu1 %v1257_v11 }
 0x115   : > { %1108 = vmatpush3.bf16.msra.mxu1 %v1258_v12 }
 0x116   : > { %1109 = vmatprep.subr.bf16.mxu1 %v1259_v13 }
 0x1db   : > { %v1167_v26 = vpop.f32.mrb[0].mxu1 }
 0x1dc   : > { %v457_v27 = vadd.f32 %v1167_v26, %v229_v14  ;;  %v448_v28 = vpop.f32.mrb[1].mxu1  ;;  %v1260_v14 = vld [vmem:[%s1681_s3 + $0x20] sm:$0xff]  }
 0x1dd   : > { %v449_v29 = vadd.f32 %v448_v28, %v1486_v25  ;;  %v1168_v30 = vpop.f32.mrb[2].mxu1  ;;  %1110 = vmatpush3.bf16.msra.mxu1 %v1260_v14  ;;  %v1592_v28 = vshrl.u32 %v508_v22, 7 }
 0x1de   : > { %467 = vadd.xlane.f32.xlu1 %v457_v27  ;;  %v451_v32 = vpop.f32.mrb[3].mxu1  ;;  %v460_v33 = vadd.f32 %v1168_v30, %v230_v15  ;;  %v1261_v15 = vld [vmem:[%s1681_s3 + $0x68] sm:$0xff]  }
 0x1df   : > { %463 = vadd.xlane.f32.xlu0 %v449_v29  ;;  %v452_v34 = vadd.f32 %v451_v32, %v228_v31  ;;  %1111 = vmatprep.subr.bf16.mxu1 %v1261_v15  ;;  %v510_v31 = vsub.s32 0, %v1592_v28  ;;  %v1598_v32 = vld [vmem:[%s1682_s4] sm:$0xf]  ;;  %v518_v36 = vsub.s32 1, %v1592_v28 }
 0x1e1   : > { %1112 = vmatpush3.bf16.msra.mxu1 %v1262_v16  ;;  %v511_v35 = vrot.slane %v1598_v32, %v510_v31 }
 0x1e2   : > { %469 = vadd.xlane.f32.xlu1 %v460_v33  ;;  %1113 = vmatprep.subr.bf16.mxu1 %v1263_v56 }
 0x1e3   : > { %465 = vadd.xlane.f32.xlu0 %v452_v34 }
 0x26b   : > { %v468_v39 = vpop.xlane.xlu1 %467 }
 0x26c   : > { %v464_v40 = vpop.xlane.xlu0 %463  ;;  %v474_v41 = vmul.f32 0.0078125, %v468_v39 }
 0x26d   : > { %v472_v42 = vmul.f32 0.0078125, %v464_v40  ;;  %v519_v40 = vrot.slane %v1598_v32, %v518_v36 }
 0x26e   : > { %v1504_v46 = vsub.f32 %v457_v27, %v474_v41 }
 0x26f   : > { %v1502_v43 = vsub.f32 %v449_v29, %v472_v42  ;;  %v470_v44 = vpop.xlane.xlu1 %469 }
 0x270   : > { %v466_v45 = vpop.xlane.xlu0 %465  ;;  %v475_v47 = vmul.f32 0.0078125, %v470_v44  ;;  %v482_v52 = vmul.f32 %v1504_v46, %v1504_v46 }
 0x271   : > { %v473_v48 = vmul.f32 0.0078125, %v466_v45  ;;  %v480_v49 = vmul.f32 %v1502_v43, %v1502_v43 }
 0x272   : > { %v1510_v51 = vsub.f32 %v460_v33, %v475_v47 }
 0x273   : > { %v1508_v50 = vsub.f32 %v452_v34, %v473_v48  ;;  %484 = vadd.xlane.f32.xlu0 %v480_v49 }
 0x274   : > { %v483_v54 = vmul.f32 %v1510_v51, %v1510_v51 }
 0x275   : > { %v481_v53 = vmul.f32 %v1508_v50, %v1508_v50 }
 0x277   : > { %488 = vadd.xlane.f32.xlu0 %v482_v52  ;;  %486 = vadd.xlane.f32.xlu1 %v481_v53 }
 0x27b   : > { %490 = vadd.xlane.f32.xlu1 %v483_v54 }
 0x300   : > { %v485_v17 = vpop.xlane.xlu0 %484 }
 0x301   : > { %v492_v18 = vmul.f32 0.0078125, %v485_v17 }
 0x303   : > { %v496_v19 = vadd.f32 1e-05, %v492_v18 }
 0x304   : > { %v487_v20 = vpop.xlane.xlu1 %486  ;;  %v489_v21 = vpop.xlane.xlu0 %488 }
 0x305   : > { %1267 = vrsqrt.f32 %v496_v19  ;;  %v493_v23 = vmul.f32 0.0078125, %v487_v20  ;;  %v494_v24 = vmul.f32 0.0078125, %v489_v21 }
 0x307   : > { %v497_v25 = vadd.f32 1e-05, %v493_v23  ;;  %v498_v26 = vadd.f32 1e-05, %v494_v24 }
 0x308   : > { %v491_v27 = vpop.xlane.xlu1 %490 }
 0x309   : > { %1269 = vrsqrt.f32 %v497_v25  ;;  %v495_v29 = vmul.f32 0.0078125, %v491_v27 }
 0x30a   : > { %1271 = vrsqrt.f32 %v498_v26 }
 0x30b   : > { %v499_v30 = vadd.f32 1e-05, %v495_v29 }
 0x30d   : > { %1273 = vrsqrt.f32 %v499_v30 }
 0x30f   : > { %v1268_v33 = vpop.eup %1267 }
 0x310   : > { %v504_v34 = vmul.f32 %v1268_v33, %v1502_v43 }
 0x312   : > { %v512_v39 = vmul.f32 %v511_v35, %v504_v34 }
 0x313   : > { %v1270_v37 = vpop.eup %1269 }
 0x314   : > { %v505_v38 = vmul.f32 %v1270_v37, %v1508_v50  ;;  %v1272_v41 = vpop.eup %1271  ;;  %v520_v45 = vadd.f32 %v519_v40, %v512_v39 }
 0x315   : > { %v506_v48 = vmul.f32 %v1272_v41, %v1504_v46  ;;  %v1264_v46 = vld [vmem:[%s1681_s3 + $0x30] sm:$0xff]  }
 0x316   : > { %v513_v42 = vmul.f32 %v511_v35, %v505_v38  ;;  %1114 = vmatpush3.bf16.msra.mxu1 %v1264_v46 }
 0x317   : > { %v1274_v44 = vpop.eup %1273  ;;  %v514_v53 = vmul.f32 %v511_v35, %v506_v48 }
 0x318   : > { %v521_v47 = vadd.f32 %v519_v40, %v513_v42  ;;  %v507_v49 = vmul.f32 %v1274_v44, %v1510_v51  ;;  %v1265_v51 = vld [vmem:[%s1681_s3 + $0x78] sm:$0xff]  }
 0x319   : > { %v522_v50 = vadd.f32 %v519_v40, %v514_v53  ;;  %1115 = vmatprep.subr.bf16.mxu1 %v1265_v51  ;;  %v910_v51 = vsub.s32 2, %v1592_v28 }
 0x31a   : > { %v524_v43 = vpack.c.bf16 %v521_v47, %v520_v45  ;;  %v515_v52 = vmul.f32 %v511_v35, %v507_v49  ;;  %1116 = vmatpush3.bf16.msra.mxu1 %v1266_v57 }
 0x31c   : > { %655 = vmatmul.mubr.bf16.vlgmr.msra.gmra.mrb[4].mxu0 %v524_v43  ;;  %v523_v54 = vadd.f32 %v519_v40, %v515_v52 }
 0x31d   : > { %664 = vmatprep.mubr.bf16.mxu0 %v1347_v4 }
 0x31e   : > { %v525_v55 = vpack.c.bf16 %v523_v54, %v522_v50 }
 0x324   : > { %665 = vmatmul.mubr.bf16.gmra.mrb[8].mxu0 %v525_v55 }
 0x3ef   : > { %v656_v58 = vpop.f32.mrb[4].mxu0 }
 0x3f0   : > { %v658_v59 = vpop.f32.mrb[5].mxu0  ;;  %v675_v61 = vmax.f32 %v656_v58, 0.0 }
 0x3f1   : > { %v660_v60 = vpop.f32.mrb[6].mxu0  ;;  %v676_v0 = vmax.f32 %v658_v59, 0.0 }
 0x3f2   : > { %v677_v62 = vmax.f32 %v660_v60, 0.0  ;;  %v662_v63 = vpop.f32.mrb[7].mxu0  ;;  %v918_v60 = vsub.s32 3, %v1592_v28 }
 0x3f3   : > { %v678_v1 = vmax.f32 %v662_v63, 0.0 }
 0x3f4   : > { %v683_v2 = vpack.c.bf16 %v677_v62, %v675_v61  ;;  %v911_v62 = vrot.slane %v1598_v32, %v910_v51 }
 0x3f5   : > { %v684_v3 = vpack.c.bf16 %v678_v1, %v676_v0  ;;  %v919_v0 = vrot.slane %v1598_v32, %v918_v60 }
 0x3f7   : > { %v666_v4 = vpop.f32.mrb[8].mxu0  ;;  %847 = vmatprep.mubr.bf16.mxu1 %v684_v3 }
 0x3f8   : > { %v668_v5 = vpop.f32.mrb[9].mxu0  ;;  %848 = vmatmul.mubr.bf16.vlgmr.msra.gmra.mrb[4].mxu1 %v683_v2  ;;  %v679_v7 = vmax.f32 %v666_v4, 0.0 }
 0x3f9   : > { %v670_v6 = vpop.f32.mrb[10].mxu0  ;;  %v680_v10 = vmax.f32 %v668_v5, 0.0 }
 0x3fa   : > { %v681_v8 = vmax.f32 %v670_v6, 0.0  ;;  %v672_v9 = vpop.f32.mrb[11].mxu0 }
 0x3fb   : > { %v682_v11 = vmax.f32 %v672_v9, 0.0 }
 0x3fc   : > { %v685_v12 = vpack.c.bf16 %v681_v8, %v679_v7 }
 0x3fd   : > { %v686_v13 = vpack.c.bf16 %v682_v11, %v680_v10 }
 0x3ff   : > { %855 = vmatprep.mubr.bf16.mxu1 %v686_v13 }
 0x400   : > { %856 = vmatmul.mubr.bf16.gmra.mrb[8].mxu1 %v685_v12 }
 0x4cb   : > { %v1117_v14 = vpop.f32.mrb[4].mxu1 }
 0x4cc   : > { %v1118_v15 = vpop.f32.mrb[5].mxu1 }
 0x4cd   : > { %v1119_v16 = vadd.f32 %v1118_v15, %v1117_v14  ;;  %v1120_v17 = vpop.f32.mrb[6].mxu1 }
 0x4ce   : > { %v1121_v18 = vpop.f32.mrb[7].mxu1 }
 0x4cf   : > { %v1122_v19 = vadd.f32 %v1121_v18, %v1120_v17  ;;  %v850_v20 = vadd.f32 %v1119_v16, %v520_v45 }
 0x4d1   : > { %864 = vadd.xlane.f32.xlu0 %v850_v20  ;;  %v853_v21 = vadd.f32 %v1122_v19, %v521_v47 }
 0x4d3   : > { %866 = vadd.xlane.f32.xlu1 %v853_v21  ;;  %v1123_v22 = vpop.f32.mrb[8].mxu1 }
 0x4d4   : > { %v1124_v23 = vpop.f32.mrb[9].mxu1 }
 0x4d5   : > { %v1125_v24 = vadd.f32 %v1124_v23, %v1123_v22  ;;  %v1126_v25 = vpop.f32.mrb[10].mxu1 }
 0x4d6   : > { %v1127_v26 = vpop.f32.mrb[11].mxu1 }
 0x4d7   : > { %v1128_v27 = vadd.f32 %v1127_v26, %v1126_v25  ;;  %v858_v29 = vadd.f32 %v1125_v24, %v522_v50 }
 0x4d9   : > { %868 = vadd.xlane.f32.xlu0 %v858_v29  ;;  %v861_v30 = vadd.f32 %v1128_v27, %v523_v54 }
 0x4db   : > { %870 = vadd.xlane.f32.xlu1 %v861_v30 }
 0x55e   : > { %v865_v31 = vpop.xlane.xlu0 %864 }
 0x55f   : > { %v872_v33 = vmul.f32 0.0078125, %v865_v31 }
 0x560   : > { %v867_v34 = vpop.xlane.xlu1 %866 }
 0x561   : > { %v876_v35 = vsub.f32 %v850_v20, %v872_v33  ;;  %v873_v36 = vmul.f32 0.0078125, %v867_v34 }
 0x563   : > { %v877_v37 = vsub.f32 %v853_v21, %v873_v36  ;;  %v880_v38 = vmul.f32 %v876_v35, %v876_v35 }
 0x565   : > { %884 = vadd.xlane.f32.xlu0 %v880_v38  ;;  %v881_v39 = vmul.f32 %v877_v37, %v877_v37 }
 0x566   : > { %v869_v40 = vpop.xlane.xlu0 %868 }
 0x567   : > { %v874_v41 = vmul.f32 0.0078125, %v869_v40  ;;  %886 = vadd.xlane.f32.xlu1 %v881_v39 }
 0x568   : > { %v871_v42 = vpop.xlane.xlu1 %870 }
 0x569   : > { %v878_v44 = vsub.f32 %v858_v29, %v874_v41  ;;  %v875_v45 = vmul.f32 0.0078125, %v871_v42 }
 0x56b   : > { %v879_v47 = vsub.f32 %v861_v30, %v875_v45  ;;  %v882_v48 = vmul.f32 %v878_v44, %v878_v44 }
 0x56d   : > { %888 = vadd.xlane.f32.xlu0 %v882_v48  ;;  %v883_v49 = vmul.f32 %v879_v47, %v879_v47 }
 0x56f   : > { %890 = vadd.xlane.f32.xlu1 %v883_v49 }
 0x5f2   : > { %v885_v43 = vpop.xlane.xlu0 %884 }
 0x5f3   : > { %v892_v52 = vmul.f32 0.0078125, %v885_v43 }
 0x5f4   : > { %v887_v53 = vpop.xlane.xlu1 %886 }
 0x5f5   : > { %v896_v54 = vadd.f32 1e-05, %v892_v52  ;;  %v893_v50 = vmul.f32 0.0078125, %v887_v53 }
 0x5f7   : > { %1275 = vrsqrt.f32 %v896_v54  ;;  %v897_v55 = vadd.f32 1e-05, %v893_v50 }
 0x5f9   : > { %1277 = vrsqrt.f32 %v897_v55 }
 0x5fa   : > { %v889_v56 = vpop.xlane.xlu0 %888 }
 0x5fb   : > { %v894_v46 = vmul.f32 0.0078125, %v889_v56 }
 0x5fc   : > { %v891_v57 = vpop.xlane.xlu1 %890 }
 0x5fd   : > { %v898_v58 = vadd.f32 1e-05, %v894_v46  ;;  %v895_v59 = vmul.f32 0.0078125, %v891_v57 }
 0x5ff   : > { %1279 = vrsqrt.f32 %v898_v58  ;;  %v899_v61 = vadd.f32 1e-05, %v895_v59 }
 0x601   : > { %v1276_v63 = vpop.eup %1275  ;;  %1281 = vrsqrt.f32 %v899_v61 }
 0x602   : > { %v904_v1 = vmul.f32 %v1276_v63, %v876_v35 }
 0x603   : > { %v1278_v2 = vpop.eup %1277 }
 0x604   : > { %v912_v3 = vmul.f32 %v911_v62, %v904_v1  ;;  %v905_v4 = vmul.f32 %v1278_v2, %v877_v37 }
 0x606   : > { %v920_v5 = vadd.f32 %v919_v0, %v912_v3  ;;  %v913_v6 = vmul.f32 %v911_v62, %v905_v4 }
 0x608   : > { %924 = vst [vmem:[%s218_s15] sm:$0xff] %v920_v5  ;;  %v921_v28 = vadd.f32 %v919_v0, %v913_v6 }
 0x609   : > { %v1280_v7 = vpop.eup %1279 }
 0x60a   : > { %925 = vst [vmem:[%s218_s15 + $0x8] sm:$0xff] %v921_v28  ;;  %v906_v8 = vmul.f32 %v1280_v7, %v878_v44 }
 0x60b   : > { %v1282_v9 = vpop.eup %1281 }
 0x60c   : > { %v914_v10 = vmul.f32 %v911_v62, %v906_v8  ;;  %v907_v32 = vmul.f32 %v1282_v9, %v879_v47 }
 0x60e   : > { %v922_v11 = vadd.f32 %v919_v0, %v914_v10  ;;  %v915_v12 = vmul.f32 %v911_v62, %v907_v32 }
 0x610   : > { %926 = vst [vmem:[%s218_s15 + $0x10] sm:$0xff] %v922_v11  ;;  %v923_v13 = vadd.f32 %v919_v0, %v915_v12 }
 0x612   : > { %927 = vst [vmem:[%s218_s15 + $0x18] sm:$0xff] %v923_v13 }
 0x613   : > { %1296 = shalt.err (!%p1293_p3)
}
 0x614   : > { %s1297_s8 = scalar_lea.hbm %s1631_s26, 512  ;;  %s1301_s11 = scalar_lea.hbm %s1683_s5, 1024 }
 0x615   : > { %p1298_p4 = scmp.ne.s32.totalorder %s1631_s26, %s1297_s8  ;;  %p1302_p9 = scmp.lt.u32.totalorder %s1631_s26, %s1683_s5 }
 0x616   : > { %p1303_p10 = scmp.lt.u32.totalorder %s1301_s11, %s1297_s8  ;;  %p1305_p12 = scmp.lt.u32.totalorder %s1297_s8, %s1631_s26 }
 0x617   : > { %p1299_p7 = pnand %p1298_p4, %p1419_p5 }
 0x618   : > { %p1304_p11 = por %p1303_p10, %p1302_p9 }
 0x619   : > { %p1300_p8 = pneg %p1299_p7 }
 0x61a   : > { %p1306_p13 = por %p1305_p12, %p1304_p11 }
 0x61c   : > { %p1307_p0 = pnand %p1306_p13, %p1300_p8 }
 0x61e   : > { %1310 = shalt.err (!%p1307_p0)
}
 0x61f   : > { %s1349_s15 = smov 128   ;;  %s1350_s16 = smov 8  }
 0x620   : > { %1169 = dma.vmem_to_hbm [thread:$0]  (%p1419_p5), %s1633_s17, 512, %s1631_s26, %s1637_s13, %s1349_s15, %s1349_s15, %s1350_s16  }
 0x621 PF: > { %p1175_p1 = scmp.ge.s32.totalorder %s1345_s21, 2  ;;  %s957_s23 = sand.u32 1, %s1333_s18  }
 0x622   : > { %s958_s25 = scalar_lea.sflag [#allocation3], %s957_s23 }
 0x623   : > { %p1172_p2 = pnand %p1175_p1, %p1423_p6 }
 0x625   : > { %1328 = dma.done.wait (!%p1172_p2), %s958_s25, 512  }
 0x626   : > { %1330 = vsyncadd (!%p1172_p2), %s958_s25, 4294966784  ;;  %p15_p3 = scmp.ge.s32.totalorder %s1406_s24, 4   ;;  %s1686_s18 = smov %s1337_s19 }
 0x627   : > { %s1687_s19 = smov %s1341_s20  ;;  %s1688_s20 = smov %s1417_s27 }
 0x628   : > { %s1689_s21 = smov %s1406_s24  ;;  %17 = sbr.rel (!%p15_p3) target bundleno = 3 (0x3), region = 76 }
 0x62f   :  { %963 = vsyncpa [#allocation3], 1 }
 0x630   :  { %965 = vsyncpa [#allocation3 + $0x1], 1 }

</bundles_post_ra>
